<compile_context>
chip_gen: v5e
topology: v5e:2x2
jax: 0.10.0
libtpu: 0.0.40
codegen_flags: <defaults>
</compile_context>

<pallas_src>
import functools
import math

import jax
import jax.numpy as jnp
from jax.experimental import pallas as pl
from jax.experimental.pallas import tpu as pltpu

_COMPUTE_DTYPE = jnp.bfloat16  # MXU operand dtype; accumulation stays float32.


def _mha_kernel(q_ref, k_ref, v_ref,
                wq_ref, wk_ref, wv_ref, wo_ref,
                bq_ref, bk_ref, bv_ref, bo_ref,
                o_ref, *, num_heads, head_dim):
    """One (batch, q-tile) grid step.

    q_ref          : (tq, D)  query rows for this tile
    k_ref / v_ref  : (S,  D)  full key/value sequence for this batch element
    w*_ref         : (D,  D)  weights, pre-transposed so y = x @ W + b
    b*_ref         : (1,  D)  biases (lane-aligned rows)
    o_ref          : (tq, D)
    """
    cdt = _COMPUTE_DTYPE
    f32 = jnp.float32
    scale = 1.0 / math.sqrt(head_dim)

    # ---- input projections: bf16 operands on the MXU, f32 accumulation -----
    q = jnp.dot(q_ref[...].astype(cdt), wq_ref[...].astype(cdt),
                preferred_element_type=f32) + bq_ref[...]
    k = jnp.dot(k_ref[...].astype(cdt), wk_ref[...].astype(cdt),
                preferred_element_type=f32) + bk_ref[...]
    v = jnp.dot(v_ref[...].astype(cdt), wv_ref[...].astype(cdt),
                preferred_element_type=f32) + bv_ref[...]

    # Fold the softmax scale into Q once (S*D VPU mults instead of H*S*S).
    q = q * scale

    q_b = q.astype(cdt)
    k_b = k.astype(cdt)
    v_b = v.astype(cdt)
    wo_b = wo_ref[...].astype(cdt)

    tq = q_ref.shape[0]
    d_model = wo_ref.shape[1]
    out_acc = jnp.zeros((tq, d_model), dtype=f32)

    # TODO(synk): attn_mask / key_padding_mask path (mask=None here) and
    # training-mode dropout on the attention probabilities are not implemented.
    for h in range(num_heads):                 # static unroll; heads stay in vregs
        lo = h * head_dim
        qh = q_b[:, lo:lo + head_dim]           # (tq, hd)
        kh = k_b[:, lo:lo + head_dim]           # (S,  hd)
        vh = v_b[:, lo:lo + head_dim]           # (S,  hd)

        # scores = (q * scale) @ k^T  (contract last dims; no explicit transpose)
        s = jax.lax.dot_general(qh, kh, (((1,), (1,)), ((), ())),
                                preferred_element_type=f32)          # (tq, S)

        # Numerically stable softmax numerator in f32; normalization deferred.
        s_max = jnp.max(s, axis=-1, keepdims=True)
        e = jnp.exp(s - s_max)                                       # (tq, S)
        inv_denom = pl.reciprocal(jnp.sum(e, axis=-1, keepdims=True),
                                  approx=True)                       # (tq, 1)

        # PV on the MXU with unnormalized probabilities, then rescale rows.
        ctx = jnp.dot(e.astype(cdt), vh, preferred_element_type=f32)  # (tq, hd)
        ctx = (ctx * inv_denom).astype(cdt)

        # Per-head output projection: out += ctx_h @ Wo[lo:lo+hd, :].
        # Replaces the lane-axis concat of sub-128-wide head tiles.
        out_acc = out_acc + jnp.dot(ctx, wo_b[lo:lo + head_dim, :],
                                    preferred_element_type=f32)

    # TODO(synk): for real configs keep D a multiple of 128 (or pad) so this
    # store is lane-dense; D=32 here means a masked vst on the toy shape.
    o_ref[...] = (out_acc + bo_ref[...]).astype(o_ref.dtype)


def _choose_q_tile(seq_len):
    """Full sequence for small S; otherwise the largest aligned tile dividing S
    so the per-step (tq, S) score block stays modest in VMEM."""
    if seq_len <= 512:
        return seq_len
    for t in (512, 256, 128):
        if seq_len % t == 0:
            return t
    return seq_len


def _vmem_limit_bytes():
    """Raise the scoped-VMEM limit towards the chip's capacity, with headroom.
    Falls back to the compiler default if the hardware query is unavailable."""
    try:
        cap = pltpu.get_tpu_info().vmem_capacity_bytes
        return min(int(cap * 3 // 4), 96 * 1024 * 1024)
    except Exception:
        return None


def multihead_attention_forward(query, key, value,
                                wq, wk, wv, wo, bq, bk, bv, bo,
                                *, num_heads):
    """query/key/value: (B, S, D) float32.
    w*: (D, D) laid out so y = x @ w + b (transpose of nn.Linear.weight).
    b*: (D,)."""
    B, S, D = query.shape
    assert key.shape == (B, S, D) and value.shape == (B, S, D)
    assert D % num_heads == 0, "d_model must be divisible by num_heads"
    head_dim = D // num_heads

    q_tile = _choose_q_tile(S)
    assert S % q_tile == 0
    n_q = S // q_tile

    # Biases as (1, D) rows so the kernel adds lane-aligned 2-D tiles.
    bq2, bk2, bv2, bo2 = (b.reshape(1, D) for b in (bq, bk, bv, bo))

    kernel = functools.partial(_mha_kernel, num_heads=num_heads,
                               head_dim=head_dim)

    # Batch dim squeezed out of the kernel view (None in block_shape).
    q_spec = pl.BlockSpec((None, q_tile, D), lambda b, qi: (b, qi, 0))
    kv_spec = pl.BlockSpec((None, S, D), lambda b, qi: (b, 0, 0))
    w_spec = pl.BlockSpec((D, D), lambda b, qi: (0, 0))   # constant -> stays resident
    b_spec = pl.BlockSpec((1, D), lambda b, qi: (0, 0))
    out_spec = pl.BlockSpec((None, q_tile, D), lambda b, qi: (b, qi, 0))

    params = dict(dimension_semantics=("parallel", "parallel"))
    vmem_limit = _vmem_limit_bytes()
    if vmem_limit is not None:
        params["vmem_limit_bytes"] = vmem_limit

    return pl.pallas_call(
        kernel,
        out_shape=jax.ShapeDtypeStruct((B, S, D), query.dtype),
        grid_spec=pltpu.PrefetchScalarGridSpec(
            num_scalar_prefetch=0,
            grid=(B, n_q),
            in_specs=[q_spec, kv_spec, kv_spec,
                      w_spec, w_spec, w_spec, w_spec,
                      b_spec, b_spec, b_spec, b_spec],
            out_specs=out_spec,
        ),
        compiler_params=pltpu.CompilerParams(**params),
    )(query, key, value, wq, wk, wv, wo, bq2, bk2, bv2, bo2)


def _mha_reference(query, key, value, wq, wk, wv, wo, bq, bk, bv, bo, num_heads,
                   compute_dtype=jnp.float32):
    """Plain-JAX reference matching the PyTorch module (eval mode, mask=None);
    weights already in x @ w layout.  `compute_dtype` lets us emulate the
    kernel's bf16 MXU operands (accumulation stays f32)."""
    B, S, D = query.shape
    hd = D // num_heads
    cd = compute_dtype
    f32 = jnp.float32

    q = jnp.einsum("bsd,de->bse", query.astype(cd), wq.astype(cd),
                   preferred_element_type=f32) + bq
    k = jnp.einsum("bsd,de->bse", key.astype(cd), wk.astype(cd),
                   preferred_element_type=f32) + bk
    v = jnp.einsum("bsd,de->bse", value.astype(cd), wv.astype(cd),
                   preferred_element_type=f32) + bv
    q = q.reshape(B, S, num_heads, hd).transpose(0, 2, 1, 3)
    k = k.reshape(B, S, num_heads, hd).transpose(0, 2, 1, 3)
    v = v.reshape(B, S, num_heads, hd).transpose(0, 2, 1, 3)
    s = jnp.einsum("bhqd,bhkd->bhqk", q.astype(cd), k.astype(cd),
                   preferred_element_type=f32) / math.sqrt(hd)
    p = jax.nn.softmax(s, axis=-1)
    ctx = jnp.einsum("bhqk,bhkd->bhqd", p.astype(cd), v.astype(cd),
                     preferred_element_type=f32)
    ctx = ctx.transpose(0, 2, 1, 3).reshape(B, S, D)
    return jnp.einsum("bsd,de->bse", ctx.astype(cd), wo.astype(cd),
                      preferred_element_type=f32) + bo


if __name__ == "__main__":
    B, S, D, H = 2, 8, 32, 4

    root = jax.random.PRNGKey(0)
    ks = jax.random.split(root, 11)

    query = jax.random.normal(ks[0], (B, S, D), dtype=jnp.float32)
    key_in = jax.random.normal(ks[1], (B, S, D), dtype=jnp.float32)
    value = jax.random.normal(ks[2], (B, S, D), dtype=jnp.float32)

    def init_w(k):
        return jax.random.normal(k, (D, D), dtype=jnp.float32) / math.sqrt(D)

    def init_b(k):
        return jax.random.normal(k, (D,), dtype=jnp.float32) * 0.1

    wq, wk, wv, wo = (init_w(k) for k in ks[3:7])
    bq, bk, bv, bo = (init_b(k) for k in ks[7:11])

    out = multihead_attention_forward(
        query, key_in, value, wq, wk, wv, wo, bq, bk, bv, bo, num_heads=H)
    out = jax.block_until_ready(out)

    assert out.shape == (B, S, D)
    assert out.dtype == jnp.float32

    # Tight check vs a reference that mirrors the kernel's bf16 MXU operands.
    ref_bf16 = _mha_reference(query, key_in, value, wq, wk, wv, wo,
                              bq, bk, bv, bo, H, compute_dtype=jnp.bfloat16)
    assert jnp.allclose(out, ref_bf16, atol=2e-2, rtol=2e-2), \
        "mismatch vs bf16-operand reference"

    # Looser sanity check vs the full-precision (PyTorch-semantics) reference;
    # the gap is the expected bf16-operand rounding, not a structural bug.
    ref_f32 = _mha_reference(query, key_in, value, wq, wk, wv, wo,
                             bq, bk, bv, bo, H, compute_dtype=jnp.float32)
    assert jnp.allclose(out, ref_f32, atol=1e-1, rtol=1e-1), \
        "mismatch vs f32 reference"

    print("KERNEL_OK")
</pallas_src>

<mosaic_0001>
module attributes {stable_mosaic.version = 11 : i64} {
  func.func @_mha_kernel(%arg0: i32, %arg1: i32, %arg2: memref<1x8x32xf32, #tpu.memory_space<vmem>>, %arg3: memref<1x8x32xf32, #tpu.memory_space<vmem>>, %arg4: memref<1x8x32xf32, #tpu.memory_space<vmem>>, %arg5: memref<32x32xf32, #tpu.memory_space<vmem>>, %arg6: memref<32x32xf32, #tpu.memory_space<vmem>>, %arg7: memref<32x32xf32, #tpu.memory_space<vmem>>, %arg8: memref<32x32xf32, #tpu.memory_space<vmem>>, %arg9: memref<1x32xf32, #tpu.memory_space<vmem>>, %arg10: memref<1x32xf32, #tpu.memory_space<vmem>>, %arg11: memref<1x32xf32, #tpu.memory_space<vmem>>, %arg12: memref<1x32xf32, #tpu.memory_space<vmem>>, %arg13: memref<1x8x32xf32, #tpu.memory_space<vmem>>) attributes {dimension_semantics = [#tpu.dimension_semantics<parallel>, #tpu.dimension_semantics<parallel>], iteration_bounds = array<i64: 2, 1>, scalar_prefetch = 0 : i64, scratch_operands = 0 : i64, tpu.core_type = #tpu.core_type<tc>, window_params = [{transform_indices = @transform_0, window_bounds = array<i64: 1, 8, 32>}, {transform_indices = @transform_1, window_bounds = array<i64: 1, 8, 32>}, {transform_indices = @transform_2, window_bounds = array<i64: 1, 8, 32>}, {pipeline_mode = #tpu.pipeline_mode<synchronous>, transform_indices = @transform_3, window_bounds = array<i64: 32, 32>}, {pipeline_mode = #tpu.pipeline_mode<synchronous>, transform_indices = @transform_4, window_bounds = array<i64: 32, 32>}, {pipeline_mode = #tpu.pipeline_mode<synchronous>, transform_indices = @transform_5, window_bounds = array<i64: 32, 32>}, {pipeline_mode = #tpu.pipeline_mode<synchronous>, transform_indices = @transform_6, window_bounds = array<i64: 32, 32>}, {pipeline_mode = #tpu.pipeline_mode<synchronous>, transform_indices = @transform_7, window_bounds = array<i64: 1, 32>}, {pipeline_mode = #tpu.pipeline_mode<synchronous>, transform_indices = @transform_8, window_bounds = array<i64: 1, 32>}, {pipeline_mode = #tpu.pipeline_mode<synchronous>, transform_indices = @transform_9, window_bounds = array<i64: 1, 32>}, {pipeline_mode = #tpu.pipeline_mode<synchronous>, transform_indices = @transform_10, window_bounds = array<i64: 1, 32>}, {transform_indices = @transform_11, window_bounds = array<i64: 1, 8, 32>}]} {
    %c0 = arith.constant 0 : index
    %c0_0 = arith.constant 0 : index
    %c0_1 = arith.constant 0 : index
    %0 = vector.load %arg2[%c0, %c0_0, %c0_1] : memref<1x8x32xf32, #tpu.memory_space<vmem>>, vector<1x8x32xf32>
    %1 = vector.shape_cast %0 : vector<1x8x32xf32> to vector<8x32xf32>
    %2 = arith.truncf %1 : vector<8x32xf32> to vector<8x32xbf16>
    %c0_2 = arith.constant 0 : index
    %c0_3 = arith.constant 0 : index
    %3 = vector.load %arg5[%c0_2, %c0_3] : memref<32x32xf32, #tpu.memory_space<vmem>>, vector<32x32xf32>
    %4 = arith.truncf %3 : vector<32x32xf32> to vector<32x32xbf16>
    %cst = arith.constant dense<0.000000e+00> : vector<8x32xf32>
    %5 = tpu.matmul %2, %4, %cst {dimension_numbers = #tpu.dot_dimension_numbers<[1], [0], [0], [1], [0, 0, 1, 1], [], []>} : vector<8x32xbf16>, vector<32x32xbf16>, vector<8x32xf32> -> vector<8x32xf32>
    %c0_4 = arith.constant 0 : index
    %c0_5 = arith.constant 0 : index
    %6 = vector.load %arg9[%c0_4, %c0_5] : memref<1x32xf32, #tpu.memory_space<vmem>>, vector<1x32xf32>
    %7 = vector.broadcast %6 : vector<1x32xf32> to vector<8x32xf32>
    %8 = arith.addf %5, %7 : vector<8x32xf32>
    %c0_6 = arith.constant 0 : index
    %c0_7 = arith.constant 0 : index
    %c0_8 = arith.constant 0 : index
    %9 = vector.load %arg3[%c0_6, %c0_7, %c0_8] : memref<1x8x32xf32, #tpu.memory_space<vmem>>, vector<1x8x32xf32>
    %10 = vector.shape_cast %9 : vector<1x8x32xf32> to vector<8x32xf32>
    %11 = arith.truncf %10 : vector<8x32xf32> to vector<8x32xbf16>
    %c0_9 = arith.constant 0 : index
    %c0_10 = arith.constant 0 : index
    %12 = vector.load %arg6[%c0_9, %c0_10] : memref<32x32xf32, #tpu.memory_space<vmem>>, vector<32x32xf32>
    %13 = arith.truncf %12 : vector<32x32xf32> to vector<32x32xbf16>
    %cst_11 = arith.constant dense<0.000000e+00> : vector<8x32xf32>
    %14 = tpu.matmul %11, %13, %cst_11 {dimension_numbers = #tpu.dot_dimension_numbers<[1], [0], [0], [1], [0, 0, 1, 1], [], []>} : vector<8x32xbf16>, vector<32x32xbf16>, vector<8x32xf32> -> vector<8x32xf32>
    %c0_12 = arith.constant 0 : index
    %c0_13 = arith.constant 0 : index
    %15 = vector.load %arg10[%c0_12, %c0_13] : memref<1x32xf32, #tpu.memory_space<vmem>>, vector<1x32xf32>
    %16 = vector.broadcast %15 : vector<1x32xf32> to vector<8x32xf32>
    %17 = arith.addf %14, %16 : vector<8x32xf32>
    %c0_14 = arith.constant 0 : index
    %c0_15 = arith.constant 0 : index
    %c0_16 = arith.constant 0 : index
    %18 = vector.load %arg4[%c0_14, %c0_15, %c0_16] : memref<1x8x32xf32, #tpu.memory_space<vmem>>, vector<1x8x32xf32>
    %19 = vector.shape_cast %18 : vector<1x8x32xf32> to vector<8x32xf32>
    %20 = arith.truncf %19 : vector<8x32xf32> to vector<8x32xbf16>
    %c0_17 = arith.constant 0 : index
    %c0_18 = arith.constant 0 : index
    %21 = vector.load %arg7[%c0_17, %c0_18] : memref<32x32xf32, #tpu.memory_space<vmem>>, vector<32x32xf32>
    %22 = arith.truncf %21 : vector<32x32xf32> to vector<32x32xbf16>
    %cst_19 = arith.constant dense<0.000000e+00> : vector<8x32xf32>
    %23 = tpu.matmul %20, %22, %cst_19 {dimension_numbers = #tpu.dot_dimension_numbers<[1], [0], [0], [1], [0, 0, 1, 1], [], []>} : vector<8x32xbf16>, vector<32x32xbf16>, vector<8x32xf32> -> vector<8x32xf32>
    %c0_20 = arith.constant 0 : index
    %c0_21 = arith.constant 0 : index
    %24 = vector.load %arg11[%c0_20, %c0_21] : memref<1x32xf32, #tpu.memory_space<vmem>>, vector<1x32xf32>
    %25 = vector.broadcast %24 : vector<1x32xf32> to vector<8x32xf32>
    %26 = arith.addf %23, %25 : vector<8x32xf32>
    %cst_22 = arith.constant 0.353553385 : f32
    %27 = vector.broadcast %cst_22 : f32 to vector<8x32xf32>
    %28 = arith.mulf %8, %27 : vector<8x32xf32>
    %29 = arith.truncf %28 : vector<8x32xf32> to vector<8x32xbf16>
    %30 = arith.truncf %17 : vector<8x32xf32> to vector<8x32xbf16>
    %31 = arith.truncf %26 : vector<8x32xf32> to vector<8x32xbf16>
    %c0_23 = arith.constant 0 : index
    %c0_24 = arith.constant 0 : index
    %32 = vector.load %arg8[%c0_23, %c0_24] : memref<32x32xf32, #tpu.memory_space<vmem>>, vector<32x32xf32>
    %33 = arith.truncf %32 : vector<32x32xf32> to vector<32x32xbf16>
    %cst_25 = arith.constant 0.000000e+00 : f32
    %34 = vector.broadcast %cst_25 : f32 to vector<8x32xf32>
    %35 = vector.extract_strided_slice %29 {offsets = [0, 0], sizes = [8, 8], strides = [1, 1]} : vector<8x32xbf16> to vector<8x8xbf16>
    %36 = vector.extract_strided_slice %30 {offsets = [0, 0], sizes = [8, 8], strides = [1, 1]} : vector<8x32xbf16> to vector<8x8xbf16>
    %37 = vector.extract_strided_slice %31 {offsets = [0, 0], sizes = [8, 8], strides = [1, 1]} : vector<8x32xbf16> to vector<8x8xbf16>
    %cst_26 = arith.constant dense<0.000000e+00> : vector<8x8xf32>
    %38 = tpu.matmul %35, %36, %cst_26 {dimension_numbers = #tpu.dot_dimension_numbers<[1], [1], [0], [0], [0, 0, 1, 0], [], []>} : vector<8x8xbf16>, vector<8x8xbf16>, vector<8x8xf32> -> vector<8x8xf32>
    %cst_27 = arith.constant dense<0xFF800000> : vector<8xf32>
    %39 = vector.multi_reduction <maximumf>, %38, %cst_27 [1] : vector<8x8xf32> to vector<8xf32>
    %40 = vector.shape_cast %39 : vector<8xf32> to vector<8x1xf32>
    %41 = vector.broadcast %40 : vector<8x1xf32> to vector<8x8xf32>
    %42 = arith.subf %38, %41 : vector<8x8xf32>
    %43 = math.exp %42 : vector<8x8xf32>
    %cst_28 = arith.constant dense<0.000000e+00> : vector<8xf32>
    %44 = vector.multi_reduction <add>, %43, %cst_28 [1] : vector<8x8xf32> to vector<8xf32>
    %45 = vector.shape_cast %44 : vector<8xf32> to vector<8x1xf32>
    %46 = tpu.reciprocal %45 {approx = true} : vector<8x1xf32> -> vector<8x1xf32>
    %47 = arith.truncf %43 : vector<8x8xf32> to vector<8x8xbf16>
    %cst_29 = arith.constant dense<0.000000e+00> : vector<8x8xf32>
    %48 = tpu.matmul %47, %37, %cst_29 {dimension_numbers = #tpu.dot_dimension_numbers<[1], [0], [0], [1], [0, 0, 1, 1], [], []>} : vector<8x8xbf16>, vector<8x8xbf16>, vector<8x8xf32> -> vector<8x8xf32>
    %49 = vector.broadcast %46 : vector<8x1xf32> to vector<8x8xf32>
    %50 = arith.mulf %48, %49 : vector<8x8xf32>
    %51 = arith.truncf %50 : vector<8x8xf32> to vector<8x8xbf16>
    %52 = vector.extract_strided_slice %33 {offsets = [0, 0], sizes = [8, 32], strides = [1, 1]} : vector<32x32xbf16> to vector<8x32xbf16>
    %cst_30 = arith.constant dense<0.000000e+00> : vector<8x32xf32>
    %53 = tpu.matmul %51, %52, %cst_30 {dimension_numbers = #tpu.dot_dimension_numbers<[1], [0], [0], [1], [0, 0, 1, 1], [], []>} : vector<8x8xbf16>, vector<8x32xbf16>, vector<8x32xf32> -> vector<8x32xf32>
    %54 = arith.addf %34, %53 : vector<8x32xf32>
    %55 = vector.extract_strided_slice %29 {offsets = [0, 8], sizes = [8, 8], strides = [1, 1]} : vector<8x32xbf16> to vector<8x8xbf16>
    %56 = vector.extract_strided_slice %30 {offsets = [0, 8], sizes = [8, 8], strides = [1, 1]} : vector<8x32xbf16> to vector<8x8xbf16>
    %57 = vector.extract_strided_slice %31 {offsets = [0, 8], sizes = [8, 8], strides = [1, 1]} : vector<8x32xbf16> to vector<8x8xbf16>
    %cst_31 = arith.constant dense<0.000000e+00> : vector<8x8xf32>
    %58 = tpu.matmul %55, %56, %cst_31 {dimension_numbers = #tpu.dot_dimension_numbers<[1], [1], [0], [0], [0, 0, 1, 0], [], []>} : vector<8x8xbf16>, vector<8x8xbf16>, vector<8x8xf32> -> vector<8x8xf32>
    %cst_32 = arith.constant dense<0xFF800000> : vector<8xf32>
    %59 = vector.multi_reduction <maximumf>, %58, %cst_32 [1] : vector<8x8xf32> to vector<8xf32>
    %60 = vector.shape_cast %59 : vector<8xf32> to vector<8x1xf32>
    %61 = vector.broadcast %60 : vector<8x1xf32> to vector<8x8xf32>
    %62 = arith.subf %58, %61 : vector<8x8xf32>
    %63 = math.exp %62 : vector<8x8xf32>
    %cst_33 = arith.constant dense<0.000000e+00> : vector<8xf32>
    %64 = vector.multi_reduction <add>, %63, %cst_33 [1] : vector<8x8xf32> to vector<8xf32>
    %65 = vector.shape_cast %64 : vector<8xf32> to vector<8x1xf32>
    %66 = tpu.reciprocal %65 {approx = true} : vector<8x1xf32> -> vector<8x1xf32>
    %67 = arith.truncf %63 : vector<8x8xf32> to vector<8x8xbf16>
    %cst_34 = arith.constant dense<0.000000e+00> : vector<8x8xf32>
    %68 = tpu.matmul %67, %57, %cst_34 {dimension_numbers = #tpu.dot_dimension_numbers<[1], [0], [0], [1], [0, 0, 1, 1], [], []>} : vector<8x8xbf16>, vector<8x8xbf16>, vector<8x8xf32> -> vector<8x8xf32>
    %69 = vector.broadcast %66 : vector<8x1xf32> to vector<8x8xf32>
    %70 = arith.mulf %68, %69 : vector<8x8xf32>
    %71 = arith.truncf %70 : vector<8x8xf32> to vector<8x8xbf16>
    %72 = vector.extract_strided_slice %33 {offsets = [8, 0], sizes = [8, 32], strides = [1, 1]} : vector<32x32xbf16> to vector<8x32xbf16>
    %cst_35 = arith.constant dense<0.000000e+00> : vector<8x32xf32>
    %73 = tpu.matmul %71, %72, %cst_35 {dimension_numbers = #tpu.dot_dimension_numbers<[1], [0], [0], [1], [0, 0, 1, 1], [], []>} : vector<8x8xbf16>, vector<8x32xbf16>, vector<8x32xf32> -> vector<8x32xf32>
    %74 = arith.addf %54, %73 : vector<8x32xf32>
    %75 = vector.extract_strided_slice %29 {offsets = [0, 16], sizes = [8, 8], strides = [1, 1]} : vector<8x32xbf16> to vector<8x8xbf16>
    %76 = vector.extract_strided_slice %30 {offsets = [0, 16], sizes = [8, 8], strides = [1, 1]} : vector<8x32xbf16> to vector<8x8xbf16>
    %77 = vector.extract_strided_slice %31 {offsets = [0, 16], sizes = [8, 8], strides = [1, 1]} : vector<8x32xbf16> to vector<8x8xbf16>
    %cst_36 = arith.constant dense<0.000000e+00> : vector<8x8xf32>
    %78 = tpu.matmul %75, %76, %cst_36 {dimension_numbers = #tpu.dot_dimension_numbers<[1], [1], [0], [0], [0, 0, 1, 0], [], []>} : vector<8x8xbf16>, vector<8x8xbf16>, vector<8x8xf32> -> vector<8x8xf32>
    %cst_37 = arith.constant dense<0xFF800000> : vector<8xf32>
    %79 = vector.multi_reduction <maximumf>, %78, %cst_37 [1] : vector<8x8xf32> to vector<8xf32>
    %80 = vector.shape_cast %79 : vector<8xf32> to vector<8x1xf32>
    %81 = vector.broadcast %80 : vector<8x1xf32> to vector<8x8xf32>
    %82 = arith.subf %78, %81 : vector<8x8xf32>
    %83 = math.exp %82 : vector<8x8xf32>
    %cst_38 = arith.constant dense<0.000000e+00> : vector<8xf32>
    %84 = vector.multi_reduction <add>, %83, %cst_38 [1] : vector<8x8xf32> to vector<8xf32>
    %85 = vector.shape_cast %84 : vector<8xf32> to vector<8x1xf32>
    %86 = tpu.reciprocal %85 {approx = true} : vector<8x1xf32> -> vector<8x1xf32>
    %87 = arith.truncf %83 : vector<8x8xf32> to vector<8x8xbf16>
    %cst_39 = arith.constant dense<0.000000e+00> : vector<8x8xf32>
    %88 = tpu.matmul %87, %77, %cst_39 {dimension_numbers = #tpu.dot_dimension_numbers<[1], [0], [0], [1], [0, 0, 1, 1], [], []>} : vector<8x8xbf16>, vector<8x8xbf16>, vector<8x8xf32> -> vector<8x8xf32>
    %89 = vector.broadcast %86 : vector<8x1xf32> to vector<8x8xf32>
    %90 = arith.mulf %88, %89 : vector<8x8xf32>
    %91 = arith.truncf %90 : vector<8x8xf32> to vector<8x8xbf16>
    %92 = vector.extract_strided_slice %33 {offsets = [16, 0], sizes = [8, 32], strides = [1, 1]} : vector<32x32xbf16> to vector<8x32xbf16>
    %cst_40 = arith.constant dense<0.000000e+00> : vector<8x32xf32>
    %93 = tpu.matmul %91, %92, %cst_40 {dimension_numbers = #tpu.dot_dimension_numbers<[1], [0], [0], [1], [0, 0, 1, 1], [], []>} : vector<8x8xbf16>, vector<8x32xbf16>, vector<8x32xf32> -> vector<8x32xf32>
    %94 = arith.addf %74, %93 : vector<8x32xf32>
    %95 = vector.extract_strided_slice %29 {offsets = [0, 24], sizes = [8, 8], strides = [1, 1]} : vector<8x32xbf16> to vector<8x8xbf16>
    %96 = vector.extract_strided_slice %30 {offsets = [0, 24], sizes = [8, 8], strides = [1, 1]} : vector<8x32xbf16> to vector<8x8xbf16>
    %97 = vector.extract_strided_slice %31 {offsets = [0, 24], sizes = [8, 8], strides = [1, 1]} : vector<8x32xbf16> to vector<8x8xbf16>
    %cst_41 = arith.constant dense<0.000000e+00> : vector<8x8xf32>
    %98 = tpu.matmul %95, %96, %cst_41 {dimension_numbers = #tpu.dot_dimension_numbers<[1], [1], [0], [0], [0, 0, 1, 0], [], []>} : vector<8x8xbf16>, vector<8x8xbf16>, vector<8x8xf32> -> vector<8x8xf32>
    %cst_42 = arith.constant dense<0xFF800000> : vector<8xf32>
    %99 = vector.multi_reduction <maximumf>, %98, %cst_42 [1] : vector<8x8xf32> to vector<8xf32>
    %100 = vector.shape_cast %99 : vector<8xf32> to vector<8x1xf32>
    %101 = vector.broadcast %100 : vector<8x1xf32> to vector<8x8xf32>
    %102 = arith.subf %98, %101 : vector<8x8xf32>
    %103 = math.exp %102 : vector<8x8xf32>
    %cst_43 = arith.constant dense<0.000000e+00> : vector<8xf32>
    %104 = vector.multi_reduction <add>, %103, %cst_43 [1] : vector<8x8xf32> to vector<8xf32>
    %105 = vector.shape_cast %104 : vector<8xf32> to vector<8x1xf32>
    %106 = tpu.reciprocal %105 {approx = true} : vector<8x1xf32> -> vector<8x1xf32>
    %107 = arith.truncf %103 : vector<8x8xf32> to vector<8x8xbf16>
    %cst_44 = arith.constant dense<0.000000e+00> : vector<8x8xf32>
    %108 = tpu.matmul %107, %97, %cst_44 {dimension_numbers = #tpu.dot_dimension_numbers<[1], [0], [0], [1], [0, 0, 1, 1], [], []>} : vector<8x8xbf16>, vector<8x8xbf16>, vector<8x8xf32> -> vector<8x8xf32>
    %109 = vector.broadcast %106 : vector<8x1xf32> to vector<8x8xf32>
    %110 = arith.mulf %108, %109 : vector<8x8xf32>
    %111 = arith.truncf %110 : vector<8x8xf32> to vector<8x8xbf16>
    %112 = vector.extract_strided_slice %33 {offsets = [24, 0], sizes = [8, 32], strides = [1, 1]} : vector<32x32xbf16> to vector<8x32xbf16>
    %cst_45 = arith.constant dense<0.000000e+00> : vector<8x32xf32>
    %113 = tpu.matmul %111, %112, %cst_45 {dimension_numbers = #tpu.dot_dimension_numbers<[1], [0], [0], [1], [0, 0, 1, 1], [], []>} : vector<8x8xbf16>, vector<8x32xbf16>, vector<8x32xf32> -> vector<8x32xf32>
    %114 = arith.addf %94, %113 : vector<8x32xf32>
    %c0_46 = arith.constant 0 : index
    %c0_47 = arith.constant 0 : index
    %115 = vector.load %arg12[%c0_46, %c0_47] : memref<1x32xf32, #tpu.memory_space<vmem>>, vector<1x32xf32>
    %116 = vector.broadcast %115 : vector<1x32xf32> to vector<8x32xf32>
    %117 = arith.addf %114, %116 : vector<8x32xf32>
    %c0_48 = arith.constant 0 : index
    %c0_49 = arith.constant 0 : index
    %c0_50 = arith.constant 0 : index
    %118 = vector.load %arg13[%c0_48, %c0_49, %c0_50] : memref<1x8x32xf32, #tpu.memory_space<vmem>>, vector<1x8x32xf32>
    %119 = vector.shape_cast %118 : vector<1x8x32xf32> to vector<8x32xf32>
    %120 = vector.shape_cast %117 : vector<8x32xf32> to vector<1x8x32xf32>
    tpu.vector_store %arg13[%c0_48, %c0_49, %c0_50], %120 {strides = array<i32>} : memref<1x8x32xf32, #tpu.memory_space<vmem>>, vector<1x8x32xf32>,
    return
  }
  func.func @transform_0(%arg0: i32, %arg1: i32) -> (i32, i32, i32) {
    %c0_i32 = arith.constant 0 : i32
    %c0_i32_0 = arith.constant 0 : i32
    return %arg0, %arg1, %c0_i32 : i32, i32, i32
  }
  func.func @transform_1(%arg0: i32, %arg1: i32) -> (i32, i32, i32) {
    %c0_i32 = arith.constant 0 : i32
    %c0_i32_0 = arith.constant 0 : i32
    %c0_i32_1 = arith.constant 0 : i32
    return %arg0, %c0_i32, %c0_i32_0 : i32, i32, i32
  }
  func.func @transform_2(%arg0: i32, %arg1: i32) -> (i32, i32, i32) {
    %c0_i32 = arith.constant 0 : i32
    %c0_i32_0 = arith.constant 0 : i32
    %c0_i32_1 = arith.constant 0 : i32
    return %arg0, %c0_i32, %c0_i32_0 : i32, i32, i32
  }
  func.func @transform_3(%arg0: i32, %arg1: i32) -> (i32, i32) {
    %c0_i32 = arith.constant 0 : i32
    %c0_i32_0 = arith.constant 0 : i32
    %c0_i32_1 = arith.constant 0 : i32
    return %c0_i32, %c0_i32_0 : i32, i32
  }
  func.func @transform_4(%arg0: i32, %arg1: i32) -> (i32, i32) {
    %c0_i32 = arith.constant 0 : i32
    %c0_i32_0 = arith.constant 0 : i32
    %c0_i32_1 = arith.constant 0 : i32
    return %c0_i32, %c0_i32_0 : i32, i32
  }
  func.func @transform_5(%arg0: i32, %arg1: i32) -> (i32, i32) {
    %c0_i32 = arith.constant 0 : i32
    %c0_i32_0 = arith.constant 0 : i32
    %c0_i32_1 = arith.constant 0 : i32
    return %c0_i32, %c0_i32_0 : i32, i32
  }
  func.func @transform_6(%arg0: i32, %arg1: i32) -> (i32, i32) {
    %c0_i32 = arith.constant 0 : i32
    %c0_i32_0 = arith.constant 0 : i32
    %c0_i32_1 = arith.constant 0 : i32
    return %c0_i32, %c0_i32_0 : i32, i32
  }
  func.func @transform_7(%arg0: i32, %arg1: i32) -> (i32, i32) {
    %c0_i32 = arith.constant 0 : i32
    %c0_i32_0 = arith.constant 0 : i32
    %c0_i32_1 = arith.constant 0 : i32
    return %c0_i32, %c0_i32_0 : i32, i32
  }
  func.func @transform_8(%arg0: i32, %arg1: i32) -> (i32, i32) {
    %c0_i32 = arith.constant 0 : i32
    %c0_i32_0 = arith.constant 0 : i32
    %c0_i32_1 = arith.constant 0 : i32
    return %c0_i32, %c0_i32_0 : i32, i32
  }
  func.func @transform_9(%arg0: i32, %arg1: i32) -> (i32, i32) {
    %c0_i32 = arith.constant 0 : i32
    %c0_i32_0 = arith.constant 0 : i32
    %c0_i32_1 = arith.constant 0 : i32
    return %c0_i32, %c0_i32_0 : i32, i32
  }
  func.func @transform_10(%arg0: i32, %arg1: i32) -> (i32, i32) {
    %c0_i32 = arith.constant 0 : i32
    %c0_i32_0 = arith.constant 0 : i32
    %c0_i32_1 = arith.constant 0 : i32
    return %c0_i32, %c0_i32_0 : i32, i32
  }
  func.func @transform_11(%arg0: i32, %arg1: i32) -> (i32, i32, i32) {
    %c0_i32 = arith.constant 0 : i32
    %c0_i32_0 = arith.constant 0 : i32
    return %arg0, %arg1, %c0_i32 : i32, i32, i32
  }
}

</mosaic_0001>

<bundles_post_ra>
// kernel: tpu_custom_call.1
= control target key start
LH: loop header
LB: loop body
LE: loop exit
PB: predicated region body
PF: predicated region fallthrough
CT: control target
= control target key end

     0   :  { %s1994_s0 = inlined_call_operand.hbm [shape: f32[2,8,32], index: 0, kind: input, shape index: {}]   ;;  %s1995_s1 = inlined_call_operand.hbm [shape: f32[2,8,32], index: 1, kind: input, shape index: {}]   ;;  %s1996_s2 = inlined_call_operand.hbm [shape: f32[2,8,32], index: 2, kind: input, shape index: {}]   ;;  %s1997_s3 = inlined_call_operand.hbm [shape: f32[32,32], index: 3, kind: input, shape index: {}]   ;;  %s1998_s4 = inlined_call_operand.hbm [shape: f32[32,32], index: 4, kind: input, shape index: {}]   ;;  %s1999_s5 = inlined_call_operand.hbm [shape: f32[32,32], index: 5, kind: input, shape index: {}]   ;;  %s2000_s6 = inlined_call_operand.hbm [shape: f32[32,32], index: 6, kind: input, shape index: {}]   ;;  %s2001_s7 = inlined_call_operand.vmem [shape: f32[1,32], index: 7, kind: input, shape index: {}]   ;;  %s2002_s8 = inlined_call_operand.vmem [shape: f32[1,32], index: 8, kind: input, shape index: {}]   ;;  %s2003_s9 = inlined_call_operand.vmem [shape: f32[1,32], index: 9, kind: input, shape index: {}]   ;;  %s2004_s10 = inlined_call_operand.vmem [shape: f32[1,32], index: 10, kind: input, shape index: {}]   ;;  %s2005_s11 = inlined_call_operand.hbm [shape: f32[2,8,32], index: 11, kind: output, shape index: {}]  }
   0x1   :  { %2019 = sst [smem:[#allocation27_spill]] %s1994_s0 }
   0x2   :  { %2020 = sst [smem:[#allocation28_spill]] %s1995_s1 }
   0x3   :  { %2021 = sst [smem:[#allocation29_spill]] %s1997_s3 }
   0x4   :  { %2022 = sst [smem:[#allocation30_spill]] %s1998_s4 }
   0x5   :  { %2023 = sst [smem:[#allocation31_spill]] %s1999_s5 }
   0x6   :  { %2024 = sst [smem:[#allocation32_spill]] %s2000_s6 }
   0x7   :  { %2025 = sst [smem:[#allocation33_spill]] %s2004_s10 }
   0x8   :  { %16 = vsyncpa [#allocation3], 0 }
   0x9   :  { %18 = vsyncpa [#allocation3 + $0x1], 0 }
   0xa   :  { %19 = vsyncpa [#allocation6], 0 }
   0xb   :  { %21 = vsyncpa [#allocation6 + $0x1], 0 }
   0xc   :  { %22 = vsyncpa [#allocation9], 0 }
   0xd   :  { %23 = vsyncpa [#allocation12], 0 }
   0xe   :  { %24 = vsyncpa [#allocation4], 0 }
   0xf   :  { %26 = vsyncpa [#allocation4 + $0x1], 0  ;;  %s1710_s17 = smov 0   ;;  %s1712_s18 = smov 0  }
  0x10   :  { %s1714_s19 = smov 0   ;;  %s1716_s20 = smov 0  }
  0x11   :  { %s1718_s21 = smov 0   ;;  %s1720_s22 = smov 0  }
  0x12 LB: > { %2026 = sst [smem:[#allocation20_spill]] %s1619_s17  ;;  %s1741_s23 = sadd.s32 4294967295, %s1639_s22   ;;  %s1639_s22 = sphi %s1720_s22, %s32_s22   ;;  %s1635_s21 = sphi %s1718_s21, %s2056_s21   ;;  %s1631_s20 = sphi %s1716_s20, %s2055_s20   ;;  %s1627_s19 = sphi %s1714_s19, %s2059_s19   ;;  %s1623_s18 = sphi %s1712_s18, %s2058_s18   ;;  %s1619_s17 = sphi %s1710_s17, %s2057_s17  }
  0x13   : > { %2027 = sst [smem:[#allocation21_spill]] %s1635_s21  ;;  %p1157_p0 = scmp.ge.s32.totalorder %s1639_s22, 1 }
  0x14   : > { %2028 = sst [smem:[#allocation22_spill]] %s1639_s22  ;;  %p67_p1 = scmp.eq.s32.totalorder %s1741_s23, 0 }
  0x15   : > { %p325_p2 = scmp.lt.s32.totalorder %s1639_s22, 3  ;;  %s2029_s3 = sld [smem:[#allocation29_spill]] }
  0x16   : > { %s1641_s28 = smov [#allocation8]   ;;  %p1162_p6 = scmp.ge.s32.totalorder %s1639_s22, 2 }
  0x17   : > { %p1749_p3 = pnand %p1157_p0, %p325_p2  ;;  %s338_s29 = sshll.u32 %s1641_s28, 4  ;;  %s339_s29 = int_to_ptr.vmem [resolvable:$true] %s338_s29 }
  0x18   : > { %s2032_s5 = sld [smem:[#allocation31_spill]]  ;;  %s2006_s15 = smov 128  }
  0x19   : > { %p1221_p4 = pneg %p1749_p3  ;;  %s2008_s16 = smov 8  }
  0x1a   : > { %s1644_s24 = smov [#allocation11]   ;;  %s1156_s28 = sadd.s32 4294967294, %s1639_s22  }
  0x1b   : > { %s336_s26 = sshll.u32 %s2029_s3, 4  ;;  %p1757_p5 = pnand %p1221_p4, %p67_p1  ;;  %s337_s26 = int_to_ptr.hbm [resolvable:$true] %s336_s26 }
  0x1c   : > { %s366_s25 = sshll.u32 %s1644_s24, 4  ;;  %s44_s12 = sadd.s32 1, %s1635_s21  ;;  %s367_s25 = int_to_ptr.vmem [resolvable:$true] %s366_s25 }
  0x1d   : > { %1224 = dma.hbm_to_vmem [thread:$0]  (!%p1757_p5), %s337_s26, 512, %s339_s29, [#allocation9], %s2006_s15, %s2006_s15, %s2008_s16  }
  0x1e   : > { %s364_s14 = sshll.u32 %s2032_s5, 4  ;;  %p46_p7 = scmp.ge.s32.totalorder %s44_s12, 2  ;;  %s365_s14 = int_to_ptr.hbm [resolvable:$true] %s364_s14 }
  0x1f   : > { %1230 = dma.hbm_to_vmem [thread:$0]  (!%p1757_p5), %s365_s14, 512, %s367_s25, [#allocation12], %s2006_s15, %s2006_s15, %s2008_s16  }
  0x20   : > { %s53_s13 = sadd.s32 1, %s1627_s19  ;;  %p60_p8 = scmp.ne.s32.totalorder %s1627_s19, %s1623_s18 }
  0x21   : > { %p61_p9 = scmp.eq.s32.totalorder %s1639_s22, 0  ;;  %s2061_s12 = smov (%p46_p7, %s44_s12), 0 }
  0x22   : > { %2033 = sst [smem:[#allocation23_spill]] %s2061_s12  ;;  %p66_p11 = scmp.ne.s32.totalorder %s1623_s18, %s1619_s17 }
  0x23   : > { %p1783_p10 = por %p61_p9, %p60_p8  ;;  %s48_s29 = ssub.s32 %s1635_s21, %s2061_s12 }
  0x24   : > { %p312_p12 = scmp.eq.s32.totalorder %s1741_s23, 1  ;;  %p51_p13 = scmp.eq.s32.totalorder %s48_s29, 0 }
  0x25   : > { %p1794_p0 = por %p67_p1, %p66_p11  ;;  %p318_p4 = scmp.eq.s32.totalorder %s1156_s28, 1 }
  0x26   : > { %p1798_p2 = por %p312_p12, %p60_p8  ;;  %p1252_p9 = scmp.lt.s32.totalorder %s1639_s22, 2 }
  0x27   : > { %s1803_s25 = scalar_select %p51_p13, %s1627_s19, %s53_s13  }
  0x28   : > { %s2036_s24 = scalar_select %p1798_p2, 1, 0 }
  0x29   : > { %2038 = sst [smem:[#allocation25_spill]] %s1803_s25  ;;  %p1805_p7 = por %p318_p4, %p66_p11 }
  0x2a   : > { %2037 = sst [smem:[#allocation24_spill]] %s2036_s24  ;;  %s2014_s16 = sand.u32 1, %s1627_s19  }
  0x2b   : > { %s2039_s15 = scalar_select %p1805_p7, 1, 0 }
  0x2c   : > { %s1812_s3 = sshll.u32 %s1635_s21, 3  ;;  %s1816_s29 = sshll.u32 %s2014_s16, 3 }
  0x2d   : > { %2040 = sst [smem:[#allocation26_spill]] %s2039_s15  ;;  %p1820_p8 = pnand %p1252_p9, %p1783_p10 }
  0x2e   : > { %s426_s28 = sand.u32 1, %s1639_s22   ;;  %s2042_s1 = sld [smem:[#allocation28_spill]] }
  0x2f   : > { %s430_s15 = scalar_lea.vmem [#allocation5], %s1816_s29  ;;  %s2043_s4 = sld [smem:[#allocation30_spill]] }
  0x30   : > { %s438_s21 = sshll.u32 %s430_s15, 4  ;;  %s427_s10 = scalar_lea.sflag [#allocation6], %s426_s28  ;;  %s439_s21 = int_to_ptr.vmem [resolvable:$true] %s438_s21 }
  0x31   : > { %s1645_s22 = smov [#allocation10]   ;;  %s2044_s6 = sld [smem:[#allocation32_spill]] }
  0x32   : > { %s352_s12 = sshll.u32 %s1645_s22, 4  ;;  %s2046_s16 = smov 128   ;;  %s353_s12 = int_to_ptr.vmem [resolvable:$true] %s352_s12 }
  0x33   : > { %s1646_s28 = smov [#allocation13]   ;;  %s2047_s0 = sld [smem:[#allocation27_spill]] }
  0x34   : > { %s434_s25 = scalar_lea.hbm %s2042_s1, %s1812_s3  ;;  %s410_s13 = scalar_lea.vmem [#allocation2], %s1816_s29 }
  0x35   : > { %s436_s17 = sshll.u32 %s434_s25, 4  ;;  %s350_s24 = sshll.u32 %s2043_s4, 4  ;;  %s437_s17 = int_to_ptr.hbm [resolvable:$true] %s436_s17  ;;  %s351_s24 = int_to_ptr.hbm [resolvable:$true] %s350_s24 }
  0x36   : > { %1240 = dma.hbm_to_vmem [thread:$0]  (!%p1820_p8), %s437_s17, 128, %s439_s21, %s427_s10  }
  0x37   : > { %s378_s15 = sshll.u32 %s2044_s6, 4  ;;  %s2045_s25 = smov 8   ;;  %s379_s15 = int_to_ptr.hbm [resolvable:$true] %s378_s15 }
  0x38   : > { %1227 = dma.hbm_to_vmem [thread:$0]  (!%p1757_p5), %s351_s24, 512, %s353_s12, [#allocation9], %s2046_s16, %s2046_s16, %s2045_s25  }
  0x39   : > { %s380_s17 = sshll.u32 %s1646_s28, 4  ;;  %s415_s22 = scalar_lea.hbm %s2047_s0, %s1812_s3  ;;  %s381_s17 = int_to_ptr.vmem [resolvable:$true] %s380_s17 }
  0x3a   : > { %1233 = dma.hbm_to_vmem [thread:$0]  (!%p1757_p5), %s379_s15, 512, %s381_s17, [#allocation12], %s2046_s16, %s2046_s16, %s2045_s25  }
  0x3b   : > { %s417_s1 = sshll.u32 %s415_s22, 4  ;;  %s419_s4 = sshll.u32 %s410_s13, 4  ;;  %s418_s1 = int_to_ptr.hbm [resolvable:$true] %s417_s1  ;;  %s420_s4 = int_to_ptr.vmem [resolvable:$true] %s419_s4 }
  0x3c   : > { %s2048_s6 = sand.u32 1, %s1627_s19   ;;  %s453_s21 = scalar_lea.hbm %s1996_s2, %s1812_s3 }
  0x3d   : > { %s407_s24 = scalar_lea.sflag [#allocation3], %s2048_s6  ;;  %s455_s26 = sshll.u32 %s453_s21, 4  ;;  %s456_s26 = int_to_ptr.hbm [resolvable:$true] %s455_s26 }
  0x3e   : > { %1237 = dma.hbm_to_vmem [thread:$0]  (!%p1820_p8), %s418_s1, 128, %s420_s4, %s407_s24  }
  0x3f   : > { %s449_s0 = scalar_lea.vmem [#allocation7], %s1816_s29  ;;  %466 = sbr.rel (%p1749_p3) target bundleno = 1183 (0x49f), region = 64 }
  0x40   : > { %s457_s30 = sshll.u32 %s449_s0, 4  ;;  %s1867_s15 = sand.u32 (!%p1749_p3), 1, %s1623_s18   ;;  %s458_s30 = int_to_ptr.vmem [resolvable:$true] %s457_s30 }
  0x41   : > { %1243 = dma.hbm_to_vmem [thread:$0]  (!%p1820_p8), %s456_s26, 128, %s458_s30, %s427_s10  }
  0x42   : > { %s1870_s4 = sshll.u32 (!%p1749_p3), %s1867_s15, 3  ;;  %s469_s3 = scalar_lea.sflag (!%p1749_p3), [#allocation3], %s1867_s15 }
  0x43   : > { %s472_s6 = scalar_lea.vmem (!%p1749_p3), [#allocation2], %s1870_s4 }
  0x44   : > { %1598 = dma.done.wait (%p1794_p0), %s469_s3, 128  }
  0x45   : > { %1600 = vsyncadd (%p1794_p0), %s469_s3, 4294967168  ;;  %s478_s0 = sand.u32 1, %s1741_s23   ;;  %s482_s10 = scalar_lea.vmem [#allocation5], %s1870_s4 }
  0x46   : > { %s479_s5 = scalar_lea.sflag [#allocation6], %s478_s0 }
  0x47   : > { %1602 = dma.done.wait (%p1794_p0), %s479_s5, 256  }
  0x48   : > { %1604 = vsyncadd (%p1794_p0), %s479_s5, 4294967040  ;;  %s492_s27 = scalar_lea.vmem [#allocation7], %s1870_s4 }
  0x49   : > { %1606 = dma.done.wait (%p67_p1), [#allocation9], 1024  }
  0x4a   : > { %1608 = vsyncadd (%p67_p1), [#allocation9], 4294966272 }
  0x4b   : > { %1610 = dma.done.wait (%p67_p1), [#allocation12], 1024  }
  0x4c   : > { %1612 = vsyncadd (%p67_p1), [#allocation12], 4294966272  ;;  %v567_v0 = vld [vmem:[#allocation8 + $0x10] sm:$0xff]  ;;  %v568_v1 = vld [vmem:[#allocation8 + $0x18] sm:$0xff]  ;;  %vm575_vm0 = vcmask 261120   ;;  %vm660_vm1 = vcmask 64512  }
  0x4d   : > { %v596_v2 = vld [vmem:[#allocation10 + $0x10] sm:$0xff]  ;;  %v570_v3 = vpack.c.bf16 %v568_v1, %v567_v0  ;;  %v597_v4 = vld [vmem:[#allocation10 + $0x18] sm:$0xff]  ;;  %v565_v5 = vld [vmem:[#allocation8] sm:$0xff]  ;;  %s1647_s16 = smov 112   ;;  %s1648_s17 = smov 104   ;;  %vm694_vm2 = vcmask 1043456  }
  0x4e   : > { %v566_v6 = vld [vmem:[#allocation8 + $0x8] sm:$0xff]  ;;  %v599_v7 = vpack.c.bf16 %v597_v4, %v596_v2  ;;  %v594_v8 = vld [vmem:[#allocation10] sm:$0xff]  ;;  %v563_v11 = vld [vmem:[%s472_s6] sm:$0xff]  ;;  %s1649_s22 = smov 120   ;;  %s1194_s24 = sshll.u32 %s1631_s20, 3 }
  0x4f   : > { %v595_v9 = vld [vmem:[#allocation10 + $0x8] sm:$0xff]  ;;  %585 = vmatpush.bf16.msra.mxu0 %v570_v3  ;;  %v569_v10 = vpack.c.bf16 %v566_v6, %v565_v5  ;;  %v564_v14 = vpack.c.bf16 %v563_v11, %v563_v11  ;;  %v1315_v16 = vld [vmem:[%s2001_s7] ss:$0 sm:$0xff]  ;;  %v625_v33 = vld [vmem:[#allocation11 + $0x18] sm:$0xff]  ;;  %s989_s21 = scalar_lea.hbm %s2005_s11, %s1194_s24  ;;  %s2049_s3 = sld [smem:[#allocation33_spill]] }
  0x50   : > { %v592_v12 = vld [vmem:[%s482_s10] sm:$0xff]  ;;  %613 = vmatpush.bf16.msra.mxu1 %v599_v7  ;;  %v598_v13 = vpack.c.bf16 %v595_v9, %v594_v8  ;;  %v1316_v17 = vld [vmem:[%s2002_s8] ss:$0 sm:$0xff]  ;;  %s561_s0 = scalar_lea.vmem [#allocation14], %s1870_s4  ;;  %s993_s10 = sshll.u32 %s989_s21, 4  ;;  %s994_s10 = int_to_ptr.hbm [resolvable:$true] %s993_s10 }
  0x51   : > { %v593_v15 = vpack.c.bf16 %v592_v12, %v592_v12  ;;  %v624_v32 = vld [vmem:[#allocation11 + $0x10] sm:$0xff]  ;;  %v622_v34 = vld [vmem:[#allocation11] sm:$0xff]  ;;  %v623_v36 = vld [vmem:[#allocation11 + $0x8] sm:$0xff]  ;;  %s991_s5 = sshll.u32 %s561_s0, 4  ;;  %s978_s20 = scalar_lea.sflag [#allocation4], %s1867_s15  ;;  %s992_s5 = int_to_ptr.vmem [resolvable:$true] %s991_s5 }
  0x52   : > { %v627_v35 = vpack.c.bf16 %v625_v33, %v624_v32  ;;  %v626_v37 = vpack.c.bf16 %v623_v36, %v622_v34  ;;  %v620_v38 = vld [vmem:[%s492_s27] sm:$0xff]  ;;  %v652_v46 = vld [vmem:[#allocation13] sm:$0xff]  ;;  %s1559_s27 = sshra.s32 %s994_s10, 4  ;;  %s1565_s4 = scalar_lea.hbm %s2005_s11, 16  ;;  %s1560_s27 = int_to_ptr.hbm [resolvable:$true] %s1559_s27 }
  0x53   : > { %586 = vmatpush.bf16.msra.mxu0 %v569_v10  ;;  %v621_v39 = vpack.c.bf16 %v620_v38, %v620_v38  ;;  %v1317_v43 = vld [vmem:[%s2003_s9] ss:$0 sm:$0xff]  ;;  %v656_v47 = vpack.c.bf16 %v652_v46, %v652_v46  ;;  %v653_v46 = vld [vmem:[#allocation13 + $0x8] sm:$0xff]  ;;  %s1561_s23 = scalar_lea.hbm %s1560_s27, 8  ;;  %p1566_p10 = scmp.lt.s32.totalorder %s1560_s27, %s2005_s11 }
  0x54   : > { %614 = vmatpush.bf16.msra.mxu1 %v598_v13  ;;  %641 = vmatpush.bf16.msra.mxu2 %v627_v35  ;;  %p1562_p1 = scmp.ne.s32.totalorder %s1560_s27, %s1561_s23  ;;  %p1567_p11 = scmp.lt.s32.totalorder %s1565_s4, %s1561_s23 }
  0x55   : > { %v802_v49 = vsel %vm694_vm2, %v656_v47, 0  ;;  %v657_v47 = vpack.c.bf16 %v653_v46, %v653_v46 }
  0x56   : > { %1178 = vmatmul.msk.bf16.vlgmr.msra.gmra.mxu0 %vm575_vm0, %v564_v14  ;;  %p1563_p3 = pnand %p1562_p1, %p1798_p2  ;;  %p1568_p12 = por %p1567_p11, %p1566_p10 }
  0x57   : > { %1179 = vmatmul.msk.bf16.vlgmr.msra.gmra.mxu1 %vm575_vm0, %v593_v15 }
  0x58   : > { %642 = vmatpush.bf16.msra.mxu2 %v626_v37  ;;  %p1564_p5 = pneg %p1563_p3 }
  0x5a   : > { %p1569_p13 = pnand %p1568_p12, %p1564_p5 }
  0x5b   : > { %1180 = vmatmul.msk.bf16.vlgmr.msra.gmra.mxu2 %vm575_vm0, %v621_v39 }
  0xd3   : > { %v588_v18 = vpop.f32.mrf.mxu0 }
  0xd4   : > { %v616_v19 = vpop.f32.mrf.mxu1  ;;  %v589_v20 = vadd.f32 %v1315_v16, %v588_v18 }
  0xd5   : > { %v617_v21 = vadd.f32 %v1316_v17, %v616_v19 }
  0xd6   : > { %v648_v23 = vmul.f32 0.35355338, %v589_v20 }
  0xd7   : > { %v650_v22 = vpack.c.bf16 %v617_v21, %v617_v21 }
  0xd8   : > { %v649_v29 = vpack.c.bf16 %v648_v23, %v648_v23 }
  0xd9   : > { %v719_v24 = vunpack.c.l.b16 %v650_v22  ;;  %v665_v25 = vsel %vm660_vm1, %v650_v22, 0 }
  0xda   : > { %674 = vmatpush.bf16.xpose.msra.mxu3 %v665_v25  ;;  %v714_v30 = vunpack.c.l.b16 %v649_v29 }
  0xdb   : > { %v720_v26 = vpack.c.b16 %v719_v24, %v719_v24  ;;  %v590_v27 = vpop.f32.mrf.mxu0 }
  0xdc   : > { %v618_v28 = vpop.f32.mrf.mxu1  ;;  %v715_v31 = vpack.c.b16 %v714_v30, %v714_v30 }
  0xdd   : > { %819 = vrot.lane.b32.xlu2 %v720_v26, %s1647_s16 }
  0xde   : > { %v644_v44 = vpop.f32.mrf.mxu2 }
  0xdf   : > { %v645_v45 = vadd.f32 %v1317_v43, %v644_v44 }
  0xe1   : > { %1181 = vmatmul.msk.bf16.vlgmr.msra.gmra.mxu3 %vm660_vm1, %v649_v29  ;;  %v651_v48 = vpack.c.bf16 %v645_v45, %v645_v45 }
  0xe3   : > { %v754_v50 = vunpack.c.l.b16 %v651_v48  ;;  %v696_v51 = vsel %vm694_vm2, %v651_v48, 0  ;;  %v783_v48 = vsel %vm694_vm2, %v657_v47, 0 }
  0xe4   : > { %705 = vmatpush.bf16.msrb.mxu0 %v696_v51  ;;  %792 = vmatpush.bf16.msrb.mxu3 %v783_v48 }
  0xe5   : > { %896 = vrot.lane.b32.xlu2 %v720_v26, %s1648_s17  ;;  %v755_v52 = vpack.c.b16 %v754_v50, %v754_v50 }
  0xe6   : > { %v646_v53 = vpop.f32.mrf.mxu2 }
  0xe7   : > { %v655_v53 = vld [vmem:[#allocation13 + $0x18] sm:$0xff] }
  0xe8   : > { %811 = vmatpush.bf16.msra.mxu0 %v802_v49  ;;  %v654_v49 = vld [vmem:[#allocation13 + $0x10] sm:$0xff] }
  0xe9   : > { %v658_v50 = vpack.c.bf16 %v654_v49, %v654_v49 }
  0xeb   : > { %v878_v51 = vsel %vm694_vm2, %v658_v50, 0 }
  0xec   : > { %887 = vmatpush.bf16.msra.mxu3 %v878_v51 }
  0xed   : > { %817 = vrot.lane.b32.xlu2 %v715_v31, %s1647_s16 }
  0xf5   : > { %894 = vrot.lane.b32.xlu2 %v715_v31, %s1648_s17 }
  0xfd   : > { %756 = vrot.lane.b32.xlu2 %v755_v52, %s1649_s22 }
 0x137   : > { %v820_v55 = vpop.permute.xlu2 %819 }
 0x138   : > { %v825_v1 = vsel %vm660_vm1, %v820_v55, 0 }
 0x13f   : > { %v897_v59 = vpop.permute.xlu2 %896 }
 0x140   : > { %v902_v62 = vsel %vm660_vm1, %v897_v59, 0 }
 0x147   : > { %v818_v2 = vpop.permute.xlu2 %817 }
 0x14f   : > { %v895_v3 = vpop.permute.xlu2 %894 }
 0x157   : > { %v757_v4 = vpop.permute.xlu2 %756 }
 0x158   : > { %v762_v5 = vsel %vm694_vm2, %v757_v4, 0 }
 0x159   : > { %771 = vmatpush.bf16.msrb.mxu2 %v762_v5 }
 0x164   : > { %v676_v40 = vpop.f32.mrf.mxu3 }
 0x165   : > { %v680_v41 = vsel %vm660_vm1, %v676_v40, -inf }
 0x166   : > { %681 = vmax.xlane.f32.xlu0 %v680_v41 }
 0x16c   : > { %v678_v42 = vpop.f32.mrf.mxu3 }
 0x17a   : > { %721 = vrot.lane.b32.xlu0 %v720_v26, %s1649_s22 }
 0x1d9   : > { %v682_v54 = vpop.xlane.xlu0 %681 }
 0x1da   : > { %v683_v56 = vsub.f32 %v676_v40, %v682_v54  ;;  %v659_v54 = vpack.c.bf16 %v655_v53, %v655_v53 }
 0x1dc   : > { %v684_v57 = vmul.f32 1.442695, %v683_v56  ;;  %v955_v55 = vsel %vm694_vm2, %v659_v54, 0 }
 0x1de   : > { %1319 = vpow2.f32 %v684_v57 }
 0x1e4   : > { %v1320_v58 = vpop.eup %1319 }
 0x1e5   : > { %v686_v60 = vsel %vm660_vm1, %v1320_v58, 0.0  ;;  %v690_v61 = vpack.c.bf16 %v1320_v58, %v1320_v58 }
 0x1e6   : > { %687 = vadd.xlane.f32.xlu1 %v686_v60 }
 0x1e7   : > { %1182 = vmatmul.msk.bf16.vlgmr.msrb.gmra.mxu0 %vm660_vm1, %v690_v61 }
 0x1e8   : > { %911 = vmatpush.bf16.xpose.msrb.mxu0 %v902_v62 }
 0x1ec   : > { %v722_v63 = vpop.permute.xlu0 %721 }
 0x1ed   : > { %v727_v0 = vsel %vm660_vm1, %v722_v63, 0 }
 0x1ee   : > { %736 = vmatpush.bf16.xpose.msrb.mxu1 %v727_v0 }
 0x1f6   : > { %834 = vmatpush.bf16.xpose.msra.mxu1 %v825_v1 }
 0x1ff   : > { %716 = vrot.lane.b32.xlu1 %v715_v31, %s1649_s22 }
 0x259   : > { %v688_v6 = vpop.xlane.xlu1 %687 }
 0x25a   : > { %1321 = vrcp.f32 %v688_v6 }
 0x260   : > { %v1322_v7 = vpop.eup %1321 }
 0x264   : > { %v707_v8 = vpop.f32.mrf.mxu0 }
 0x265   : > { %v711_v9 = vmul.f32 %v1322_v7, %v707_v8 }
 0x267   : > { %v712_v10 = vpack.c.bf16 %v711_v9, %v711_v9 }
 0x269   : > { %1186 = vmatmul.msk.bf16.vlgmr.msra.gmra.mxu0 %vm660_vm1, %v712_v10 }
 0x26c   : > { %v709_v11 = vpop.f32.mrf.mxu0 }
 0x271   : > { %v717_v12 = vpop.permute.xlu1 %716 }
 0x272   : > { %1183 = vmatmul.msk.bf16.vlgmr.msrb.gmra.mxu1 %vm660_vm1, %v717_v12 }
 0x279   : > { %1190 = vmatmul.msk.bf16.vlgmr.msrb.gmra.mxu0 %vm660_vm1, %v895_v3 }
 0x282   : > { %1187 = vmatmul.msk.bf16.vlgmr.msra.gmra.mxu1 %vm660_vm1, %v818_v2 }
 0x2e6   : > { %v1929_v13 = vpop.f32.mrf.mxu0 }
 0x2ee   : > { %v815_v14 = vpop.f32.mrf.mxu0 }
 0x2ef   : > { %v738_v15 = vpop.f32.mrf.mxu1 }
 0x2f0   : > { %v742_v16 = vsel %vm660_vm1, %v738_v15, -inf }
 0x2f1   : > { %743 = vmax.xlane.f32.xlu0 %v742_v16  ;;  %v1318_v16 = vld [vmem:[%s2049_s3] ss:$0 sm:$0xff] }
 0x2f6   : > { %v913_v17 = vpop.f32.mrf.mxu0 }
 0x2f7   : > { %v740_v18 = vpop.f32.mrf.mxu1  ;;  %v917_v19 = vsel %vm660_vm1, %v913_v17, -inf }
 0x2f8   : > { %918 = vmax.xlane.f32.xlu2 %v917_v19 }
 0x2fe   : > { %v915_v20 = vpop.f32.mrf.mxu0 }
 0x2ff   : > { %v836_v21 = vpop.f32.mrf.mxu1 }
 0x300   : > { %v840_v22 = vsel %vm660_vm1, %v836_v21, -inf }
 0x301   : > { %841 = vmax.xlane.f32.xlu1 %v840_v22 }
 0x305   : > { %851 = vrot.lane.b32.xlu0 %v755_v52, %s1647_s16 }
 0x307   : > { %v838_v23 = vpop.f32.mrf.mxu1 }
 0x31a   : > { %928 = vrot.lane.b32.xlu1 %v755_v52, %s1648_s17 }
 0x364   : > { %v744_v24 = vpop.xlane.xlu0 %743 }
 0x365   : > { %v745_v25 = vsub.f32 %v738_v15, %v744_v24 }
 0x367   : > { %v746_v26 = vmul.f32 1.442695, %v745_v25 }
 0x369   : > { %1323 = vpow2.f32 %v746_v26 }
 0x36b   : > { %v919_v27 = vpop.xlane.xlu2 %918 }
 0x36c   : > { %v920_v28 = vsub.f32 %v913_v17, %v919_v27 }
 0x36e   : > { %v921_v29 = vmul.f32 1.442695, %v920_v28 }
 0x36f   : > { %v1324_v30 = vpop.eup %1323 }
 0x370   : > { %1325 = vpow2.f32 %v921_v29  ;;  %v748_v31 = vsel %vm660_vm1, %v1324_v30, 0.0  ;;  %v752_v32 = vpack.c.bf16 %v1324_v30, %v1324_v30 }
 0x371   : > { %749 = vadd.xlane.f32.xlu2 %v748_v31 }
 0x372   : > { %1184 = vmatmul.msk.bf16.vlgmr.msrb.gmra.mxu2 %vm660_vm1, %v752_v32 }
 0x374   : > { %v842_v33 = vpop.xlane.xlu1 %841 }
 0x375   : > { %v843_v34 = vsub.f32 %v836_v21, %v842_v33 }
 0x376   : > { %v1326_v35 = vpop.eup %1325 }
 0x377   : > { %v844_v36 = vmul.f32 1.442695, %v843_v34  ;;  %v852_v37 = vpop.permute.xlu0 %851  ;;  %v923_v38 = vsel %vm660_vm1, %v1326_v35, 0.0  ;;  %v927_v45 = vpack.c.bf16 %v1326_v35, %v1326_v35 }
 0x378   : > { %v857_v39 = vsel %vm694_vm2, %v852_v37, 0  ;;  %924 = vadd.xlane.f32.xlu0 %v923_v38 }
 0x379   : > { %1327 = vpow2.f32 %v844_v36  ;;  %866 = vmatpush.bf16.msra.mxu2 %v857_v39 }
 0x37d   : > { %964 = vmatpush.bf16.msrb.mxu2 %v955_v55 }
 0x37f   : > { %v1328_v40 = vpop.eup %1327 }
 0x380   : > { %v850_v41 = vpack.c.bf16 %v1328_v40, %v1328_v40  ;;  %v846_v42 = vsel %vm660_vm1, %v1328_v40, 0.0 }
 0x381   : > { %847 = vadd.xlane.f32.xlu2 %v846_v42 }
 0x382   : > { %1188 = vmatmul.msk.bf16.vlgmr.msra.gmra.mxu2 %vm660_vm1, %v850_v41 }
 0x38c   : > { %v929_v43 = vpop.permute.xlu1 %928 }
 0x38d   : > { %v934_v44 = vsel %vm694_vm2, %v929_v43, 0 }
 0x38e   : > { %943 = vmatpush.bf16.msrb.mxu1 %v934_v44 }
 0x391   : > { %1191 = vmatmul.msk.bf16.vlgmr.msrb.gmra.mxu1 %vm660_vm1, %v927_v45 }
 0x3e4   : > { %v750_v52 = vpop.xlane.xlu2 %749 }
 0x3e5   : > { %1329 = vrcp.f32 %v750_v52 }
 0x3eb   : > { %v1330_v56 = vpop.eup %1329  ;;  %v925_v63 = vpop.xlane.xlu0 %924 }
 0x3f4   : > { %v848_v60 = vpop.xlane.xlu2 %847 }
 0x3f5   : > { %v773_v57 = vpop.f32.mrf.mxu2  ;;  %1331 = vrcp.f32 %v848_v60 }
 0x3f6   : > { %v777_v58 = vmul.f32 %v1330_v56, %v773_v57  ;;  %1333 = vrcp.f32 %v925_v63 }
 0x3f8   : > { %v778_v59 = vpack.c.bf16 %v777_v58, %v777_v58 }
 0x3fa   : > { %1185 = vmatmul.msk.bf16.vlgmr.msrb.gmra.mxu3 %vm660_vm1, %v778_v59 }
 0x3fb   : > { %v1332_v62 = vpop.eup %1331 }
 0x3fc   : > { %v1334_v4 = vpop.eup %1333 }
 0x3fd   : > { %v775_v61 = vpop.f32.mrf.mxu2 }
 0x405   : > { %v868_v0 = vpop.f32.mrf.mxu2 }
 0x406   : > { %v872_v1 = vmul.f32 %v1332_v62, %v868_v0 }
 0x408   : > { %v873_v2 = vpack.c.bf16 %v872_v1, %v872_v1 }
 0x40a   : > { %1189 = vmatmul.msk.bf16.vlgmr.msra.gmra.mxu3 %vm660_vm1, %v873_v2 }
 0x40d   : > { %v870_v3 = vpop.f32.mrf.mxu2 }
 0x40e   : > { %v945_v5 = vpop.f32.mrf.mxu1 }
 0x40f   : > { %v949_v6 = vmul.f32 %v1334_v4, %v945_v5 }
 0x411   : > { %v950_v7 = vpack.c.bf16 %v949_v6, %v949_v6 }
 0x413   : > { %1192 = vmatmul.msk.bf16.vlgmr.msrb.gmra.mxu2 %vm660_vm1, %v950_v7 }
 0x416   : > { %v947_v8 = vpop.f32.mrf.mxu1 }
 0x47d   : > { %v794_v9 = vpop.f32.mrf.mxu3 }
 0x47e   : > { %v814_v12 = vadd.f32 %v1929_v13, %v794_v9 }
 0x485   : > { %v796_v10 = vpop.f32.mrf.mxu3 }
 0x48d   : > { %v889_v11 = vpop.f32.mrf.mxu3 }
 0x48e   : > { %v893_v14 = vadd.f32 %v889_v11, %v814_v12 }
 0x495   : > { %v891_v15 = vpop.f32.mrf.mxu3 }
 0x496   : > { %v966_v17 = vpop.f32.mrf.mxu2 }
 0x497   : > { %v970_v18 = vadd.f32 %v966_v17, %v893_v14 }
 0x499   : > { %v975_v19 = vadd.f32 %v1318_v16, %v970_v18 }
 0x49b   : > { %976 = vst.msk [vmem:[%s561_s0] sm:$0xff] %vm575_vm0, %v975_v19 }
 0x49c   : > { %1572 = shalt.err (!%p1569_p13)
}
 0x49d   : > { %1219 = dma.vmem_to_hbm [thread:$0]  (%p1798_p2), %s992_s5, 128, %s994_s10, %s978_s20  }
 0x49e   : > { %v968_v13 = vpop.f32.mrf.mxu2 }
 0x49f PF: > { %s2051_s15 = sld [smem:[#allocation20_spill]]  ;;  %p1245_p0 = pnand %p1162_p6, %p1805_p7 }
 0x4a0   : > { %s2053_s22 = sld [smem:[#allocation22_spill]] }
 0x4a1   : > { %p1246_p4 = pneg %p1245_p0 }
 0x4a5   : > { %s1005_s1 = sand.u32 1, %s2051_s15  }
 0x4a6   : > { %s1006_s13 = scalar_lea.sflag [#allocation4], %s1005_s1 }
 0x4a7   : > { %1614 = dma.done.wait (%p1246_p4), %s1006_s13, 128  }
 0x4a8   : > { %1616 = vsyncadd (%p1246_p4), %s1006_s13, 4294967168  ;;  %s32_s22 = sadd.s32 1, %s2053_s22   ;;  %s2054_s24 = sld [smem:[#allocation25_spill]] }
 0x4a9   : > { %p29_p9 = scmp.ge.s32.totalorder %s32_s22, 4   ;;  %s2055_s20 = sld [smem:[#allocation21_spill]] }
 0x4aa   : > { %s2056_s21 = sld [smem:[#allocation23_spill]]  ;;  %s2057_s17 = smov %s1623_s18 }
 0x4ab   : > { %s2058_s18 = smov %s1627_s19  ;;  %31 = sbr.rel (!%p29_p9) target bundleno = 18 (0x12), region = 149 }
 0x4ae   : > { %s2059_s19 = smov %s2054_s24 }
 0x4b0   :  { %1012 = vsyncpa [#allocation3], 1 }
 0x4b1   :  { %1014 = vsyncpa [#allocation3 + $0x1], 1 }
 0x4b2   :  { %1015 = vsyncpa [#allocation6], 1 }
 0x4b3   :  { %1017 = vsyncpa [#allocation6 + $0x1], 1 }
 0x4b4   :  { %1018 = vsyncpa [#allocation9], 1 }
 0x4b5   :  { %1019 = vsyncpa [#allocation12], 1 }
 0x4b6   :  { %1020 = vsyncpa [#allocation4], 1 }
 0x4b7   :  { %1022 = vsyncpa [#allocation4 + $0x1], 1 }

</bundles_post_ra>
